<compile_context>
chip_gen: v7x
topology: tpu7x:2x2x1
jax: 0.10.0
libtpu: 0.0.40
codegen_flags: <defaults>
</compile_context>

<pallas_src>
import functools

import jax
import jax.numpy as jnp
from jax.experimental import pallas as pl
from jax.experimental.pallas import tpu as pltpu

LANE = 128
MAX_TILE_ROWS = 1024   # (1024, 128) f32 = 512 KiB/block per input
NCORES = 2             # leading "parallel" grid axis (megacore split on v7x)


def _huber_partial_kernel(x_ref, t_ref, out_ref, *, m_rows, tile_rows,
                          steps_per_core, needs_mask):
    c = pl.program_id(0)   # core split ("parallel")
    s = pl.program_id(1)   # streaming reduction steps ("arbitrary")

    @pl.when(s == 0)
    def _():
        out_ref[...] = jnp.zeros_like(out_ref)

    x = x_ref[...].astype(jnp.float32)
    t = t_ref[...].astype(jnp.float32)
    d = x - t
    ad = jnp.abs(d)
    loss = jnp.where(ad < 1.0, 0.5 * d * d, ad - 0.5)

    if needs_mask:
        # Zero out rows past the logical end of the (m_rows, 128) slab
        # (covers both a partial last block and fully out-of-range blocks).
        blk = c * steps_per_core + s
        row0 = blk * tile_rows
        rows = jax.lax.broadcasted_iota(jnp.int32, (tile_rows, LANE), 0) + row0
        loss = jnp.where(rows < m_rows, loss, 0.0)

    if tile_rows % 8 == 0:
        # Fold (tile_rows, 128) -> (8, 128): pure vreg-to-vreg VPU adds.
        out_ref[...] += loss.reshape(tile_rows // 8, 8, LANE).sum(axis=0)
    else:
        # Tiny single-block case (tile_rows == m, not 8-aligned).
        out_ref[0:1, :] += loss.sum(axis=0, keepdims=True)


def patch_huber_loss(inputs, targets):
    """PatchHuberLoss.forward: mean over batch of per-sample Huber sums."""
    assert inputs.shape == targets.shape
    batch = inputs.shape[0]

    x = inputs.reshape(-1)
    t = targets.reshape(-1)
    n = x.shape[0]

    pad = (-n) % LANE
    if pad:
        # Tiny lane pad with zeros: diff == 0 -> Huber term == 0.
        x = jnp.pad(x, (0, pad))
        t = jnp.pad(t, (0, pad))

    m = (n + pad) // LANE
    x2 = x.reshape(m, LANE)
    t2 = t.reshape(m, LANE)

    tile_rows = m if m <= MAX_TILE_ROWS else MAX_TILE_ROWS
    nblocks = pl.cdiv(m, tile_rows)
    steps_per_core = pl.cdiv(nblocks, NCORES)
    needs_mask = NCORES * steps_per_core * tile_rows != m

    kernel = functools.partial(
        _huber_partial_kernel, m_rows=m, tile_rows=tile_rows,
        steps_per_core=steps_per_core, needs_mask=needs_mask)

    def in_map(c, s):
        blk = c * steps_per_core + s
        # Clamp out-of-range blocks; their contribution is masked in-kernel.
        return (jnp.minimum(blk, nblocks - 1), 0)

    partials = pl.pallas_call(
        kernel,
        out_shape=jax.ShapeDtypeStruct((NCORES * 8, LANE), jnp.float32),
        grid_spec=pltpu.PrefetchScalarGridSpec(
            num_scalar_prefetch=0,
            grid=(NCORES, steps_per_core),
            in_specs=[
                pl.BlockSpec((tile_rows, LANE), in_map),
                pl.BlockSpec((tile_rows, LANE), in_map),
            ],
            out_specs=pl.BlockSpec((8, LANE), lambda c, s: (c, 0)),
        ),
        compiler_params=pltpu.CompilerParams(
            dimension_semantics=("parallel", "arbitrary"),
        ),
    )(x2, t2)

    # Trivial scalar glue: sum of per-sample sums / batch == mean of patch sums.
    return jnp.sum(partials) / batch


def _reference(inputs, targets):
    d = inputs.astype(jnp.float32) - targets.astype(jnp.float32)
    ad = jnp.abs(d)
    l = jnp.where(ad < 1.0, 0.5 * d * d, ad - 0.5)
    return l.reshape(l.shape[0], -1).sum(axis=1).mean()


if __name__ == "__main__":
    key = jax.random.PRNGKey(0)
    k1, k2 = jax.random.split(key)

    # Small regression-style shapes: (batch=2, channels=4, H=16, W=16).
    inputs = jax.random.normal(k1, (2, 4, 16, 16), dtype=jnp.float32)
    targets = jax.random.normal(k2, (2, 4, 16, 16), dtype=jnp.float32)

    loss = patch_huber_loss(inputs, targets)
    jax.block_until_ready(loss)

    ref = _reference(inputs, targets)
    assert jnp.allclose(loss, ref, rtol=1e-4, atol=1e-4), (loss, ref)

    print("KERNEL_OK")
</pallas_src>

<mosaic_0001>
module attributes {stable_mosaic.version = 11 : i64} {
  func.func @_huber_partial_kernel(%arg0: i32, %arg1: i32, %arg2: memref<16x128xf32, #tpu.memory_space<vmem>>, %arg3: memref<16x128xf32, #tpu.memory_space<vmem>>, %arg4: memref<8x128xf32, #tpu.memory_space<vmem>>) attributes {dimension_semantics = [#tpu.dimension_semantics<parallel>, #tpu.dimension_semantics<arbitrary>], iteration_bounds = array<i64: 2, 1>, scalar_prefetch = 0 : i64, scratch_operands = 0 : i64, tpu.core_type = #tpu.core_type<tc>, window_params = [{transform_indices = @transform_0, window_bounds = array<i64: 16, 128>}, {transform_indices = @transform_1, window_bounds = array<i64: 16, 128>}, {transform_indices = @transform_2, window_bounds = array<i64: 8, 128>}]} {
    %c0_i32 = arith.constant 0 : i32
    %0 = arith.cmpi eq, %arg1, %c0_i32 : i32
    %1 = arith.extui %0 : i1 to i32
    %c0_i32_0 = arith.constant 0 : i32
    %2 = arith.cmpi ne, %1, %c0_i32_0 : i32
    scf.if %2 {
      %cst_13 = arith.constant 0.000000e+00 : f32
      %30 = vector.broadcast %cst_13 : f32 to vector<8x128xf32>
      %c0_14 = arith.constant 0 : index
      %c0_15 = arith.constant 0 : index
      %31 = vector.load %arg4[%c0_14, %c0_15] : memref<8x128xf32, #tpu.memory_space<vmem>>, vector<8x128xf32>
      tpu.vector_store %arg4[%c0_14, %c0_15], %30 {strides = array<i32>} : memref<8x128xf32, #tpu.memory_space<vmem>>, vector<8x128xf32>,
    } else {
    }
    %c0 = arith.constant 0 : index
    %c0_1 = arith.constant 0 : index
    %3 = vector.load %arg2[%c0, %c0_1] : memref<16x128xf32, #tpu.memory_space<vmem>>, vector<16x128xf32>
    %c0_2 = arith.constant 0 : index
    %c0_3 = arith.constant 0 : index
    %4 = vector.load %arg3[%c0_2, %c0_3] : memref<16x128xf32, #tpu.memory_space<vmem>>, vector<16x128xf32>
    %5 = arith.subf %3, %4 : vector<16x128xf32>
    %6 = math.absf %5 : vector<16x128xf32>
    %cst = arith.constant 1.000000e+00 : f32
    %7 = vector.broadcast %cst : f32 to vector<16x128xf32>
    %8 = arith.cmpf olt, %6, %7 : vector<16x128xf32>
    %cst_4 = arith.constant 5.000000e-01 : f32
    %9 = vector.broadcast %cst_4 : f32 to vector<16x128xf32>
    %10 = arith.mulf %9, %5 : vector<16x128xf32>
    %11 = arith.mulf %10, %5 : vector<16x128xf32>
    %cst_5 = arith.constant 5.000000e-01 : f32
    %12 = vector.broadcast %cst_5 : f32 to vector<16x128xf32>
    %13 = arith.subf %6, %12 : vector<16x128xf32>
    %14 = arith.select %8, %11, %13 : vector<16x128xi1>, vector<16x128xf32>
    %c1_i32 = arith.constant 1 : i32
    %15 = arith.muli %arg0, %c1_i32 : i32
    %16 = arith.addi %15, %arg1 : i32
    %c16_i32 = arith.constant 16 : i32
    %17 = arith.muli %16, %c16_i32 : i32
    %18 = tpu.iota {dimensions = array<i32: 0>} : vector<16x128xi32>
    %19 = vector.broadcast %17 : i32 to vector<16x128xi32>
    %20 = arith.addi %18, %19 : vector<16x128xi32>
    %c16_i32_6 = arith.constant 16 : i32
    %21 = vector.broadcast %c16_i32_6 : i32 to vector<16x128xi32>
    %22 = arith.cmpi slt, %20, %21 : vector<16x128xi32>
    %cst_7 = arith.constant 0.000000e+00 : f32
    %23 = vector.broadcast %cst_7 : f32 to vector<16x128xf32>
    %24 = arith.select %22, %14, %23 : vector<16x128xi1>, vector<16x128xf32>
    %c0_8 = arith.constant 0 : index
    %c0_9 = arith.constant 0 : index
    %25 = vector.load %arg4[%c0_8, %c0_9] : memref<8x128xf32, #tpu.memory_space<vmem>>, vector<8x128xf32>
    %26 = vector.shape_cast %24 : vector<16x128xf32> to vector<2x8x128xf32>
    %cst_10 = arith.constant dense<0.000000e+00> : vector<8x128xf32>
    %27 = vector.multi_reduction <add>, %26, %cst_10 [0] : vector<2x8x128xf32> to vector<8x128xf32>
    %28 = arith.addf %25, %27 : vector<8x128xf32>
    %c0_11 = arith.constant 0 : index
    %c0_12 = arith.constant 0 : index
    %29 = vector.load %arg4[%c0_11, %c0_12] : memref<8x128xf32, #tpu.memory_space<vmem>>, vector<8x128xf32>
    tpu.vector_store %arg4[%c0_11, %c0_12], %28 {strides = array<i32>} : memref<8x128xf32, #tpu.memory_space<vmem>>, vector<8x128xf32>,
    return
  }
  func.func @transform_0(%arg0: i32, %arg1: i32) -> (i32, i32) {
    %c1_i32 = arith.constant 1 : i32
    %0 = arith.muli %arg0, %c1_i32 : i32
    %1 = arith.addi %0, %arg1 : i32
    %c0_i32 = arith.constant 0 : i32
    %2 = arith.minsi %1, %c0_i32 : i32
    %c0_i32_0 = arith.constant 0 : i32
    %c0_i32_1 = arith.constant 0 : i32
    return %2, %c0_i32_0 : i32, i32
  }
  func.func @transform_1(%arg0: i32, %arg1: i32) -> (i32, i32) {
    %c1_i32 = arith.constant 1 : i32
    %0 = arith.muli %arg0, %c1_i32 : i32
    %1 = arith.addi %0, %arg1 : i32
    %c0_i32 = arith.constant 0 : i32
    %2 = arith.minsi %1, %c0_i32 : i32
    %c0_i32_0 = arith.constant 0 : i32
    %c0_i32_1 = arith.constant 0 : i32
    return %2, %c0_i32_0 : i32, i32
  }
  func.func @transform_2(%arg0: i32, %arg1: i32) -> (i32, i32) {
    %c0_i32 = arith.constant 0 : i32
    %c0_i32_0 = arith.constant 0 : i32
    return %arg0, %c0_i32 : i32, i32
  }
}

</mosaic_0001>

<bundles_post_ra>
// kernel: tpu_custom_call.1
= control target key start
LH: loop header
LB: loop body
LE: loop exit
PB: predicated region body
PF: predicated region fallthrough
CT: control target
= control target key end

     0   :  { %7 = vsyncpa [#allocation3], 0  ;;  %s908_s0 = inlined_call_operand.hbm [shape: f32[16,128], index: 0, kind: input, shape index: {}]   ;;  %s909_s1 = inlined_call_operand.hbm [shape: f32[16,128], index: 1, kind: input, shape index: {}]   ;;  %s910_s2 = inlined_call_operand.hbm [shape: f32[16,128], index: 2, kind: output, shape index: {}]  }
   0x1   :  { %9 = vsyncpa [#allocation3 + $0x1], 0 }
   0x2   :  { %10 = vsyncpa [#allocation6], 0 }
   0x3   :  { %12 = vsyncpa [#allocation6 + $0x1], 0 }
   0x4   :  { %13 = vsyncpa [#allocation4], 0 }
   0x5   :  { %15 = vsyncpa [#allocation4 + $0x1], 0  ;;  %s700_s9 = smov 0   ;;  %s702_s10 = smov 0  }
   0x6   :  { %s704_s11 = smov 0   ;;  %s706_s12 = smov 0  }
   0x7   :  { %s708_s13 = smov 0   ;;  %s710_s14 = smov 0  }
   0x8   :  { %s712_s15 = smov 0   ;;  %s714_s16 = smov 0  }
   0x9 LB: > { %s394_s17 = sadd.s32 4294967295, %s678_s16   ;;  %s395_s18 = sadd.s32 4294967294, %s678_s16   ;;  %s678_s16 = sphi %s714_s16, %s21_s16   ;;  %s674_s15 = sphi %s712_s15, %s929_s15   ;;  %s670_s14 = sphi %s710_s14, %s928_s14   ;;  %s666_s13 = sphi %s708_s13, %s898_s13   ;;  %s662_s12 = sphi %s706_s12, %s927_s12   ;;  %s658_s11 = sphi %s704_s11, %s926_s11   ;;  %s654_s10 = sphi %s702_s10, %s925_s10   ;;  %s650_s9 = sphi %s700_s9, %s924_s9  }
   0xa   : > { %s33_s19 = sadd.s32 1, %s674_s15  ;;  %p647_p1 = scmp.ne.s32.totalorder %s666_s13, 0 }
   0xb   : > { %p35_p0 = scmp.ge.s32.totalorder %s33_s19, 2  ;;  %p54_p2 = scmp.eq.s32.totalorder %s678_s16, 0 }
   0xc   : > { %p59_p3 = scmp.ne.s32.totalorder %s666_s13, %s662_s12  ;;  %p60_p5 = scmp.eq.s32.totalorder %s394_s17, 0 }
   0xd   : > { %s931_s19 = smov (%p35_p0, %s33_s19), 0  ;;  %p746_p4 = por %p647_p1, %p54_p2 }
   0xe   : > { %p750_p6 = por %p60_p5, %p59_p3  ;;  %s101_s22 = ssub.s32 %s674_s15, %s931_s19 }
   0xf   : > { %p102_p7 = scmp.eq.s32.totalorder %s101_s22, 0  ;;  %s104_s23 = sadd.s32 1, %s658_s11 }
  0x10   : > { %s914_s21 = scalar_select %p750_p6, 1, 0 }
  0x11   : > { %s758_s24 = scalar_select %p102_p7, %s658_s11, %s104_s23  }
  0x12   : > { %p114_p8 = scmp.ne.s32.totalorder %s658_s11, %s654_s10  ;;  %p115_p9 = scmp.eq.s32.totalorder %s394_s17, 1 }
  0x13   : > { %p120_p10 = scmp.ne.s32.totalorder %s654_s10, %s650_s9  ;;  %p121_p11 = scmp.eq.s32.totalorder %s395_s18, 1 }
  0x14   : > { %p764_p12 = por %p115_p9, %p114_p8  ;;  %p434_p1 = scmp.lt.s32.totalorder %s678_s16, 2 }
  0x15   : > { %p769_p0 = por %p121_p11, %p120_p10  ;;  %s680_s27 = smov [#allocation2]  }
  0x16   : > { %s915_s25 = scalar_select %p764_p12, 1, 0 }
  0x17   : > { %s916_s26 = scalar_select %p769_p0, 1, 0 }
  0x18   : > { %s155_s28 = sshll.u32 %s680_s27, 4  ;;  %p776_p2 = pnand %p434_p1, %p746_p4  ;;  %s156_s28 = int_to_ptr.vmem [resolvable:$true] %s155_s28 }
  0x19   : > { %s511_s4 = scalar_lea.hbm %s908_s0, 256 }
  0x1a   : > { %p512_p3 = scmp.ne.s32.totalorder %s908_s0, %s511_s4  ;;  %p513_p5 = pneg %p776_p2 }
  0x1b   : > { %p518_p8 = scmp.lt.u32.totalorder %s511_s4, %s511_s4  ;;  %p520_p9 = scmp.lt.u32.totalorder %s511_s4, %s908_s0 }
  0x1c   : > { %p514_p7 = pnand %p513_p5, %p512_p3 }
  0x1d   : > { %p521_p10 = por %p520_p9, %p518_p8 }
  0x1e   : > { %p515_p4 = pneg %p514_p7 }
  0x20   : > { %p522_p11 = pnand %p521_p10, %p515_p4 }
  0x22   : > { %525 = shalt.err (!%p522_p11)
}
  0x23   : > { %s526_s12 = scalar_lea.vmem %s156_s28, 256  ;;  %s533_s17 = scalar_lea.vmem %s156_s28, 512 }
  0x24   : > { %p527_p1 = scmp.ne.s32.totalorder %s156_s28, %s526_s12  ;;  %p534_p12 = scmp.lt.s32.totalorder %s156_s28, %s156_s28 }
  0x25   : > { %p535_p6 = scmp.lt.s32.totalorder %s533_s17, %s526_s12 }
  0x26   : > { %p529_p13 = pnand %p527_p1, %p513_p5 }
  0x27   : > { %p536_p3 = por %p535_p6, %p534_p12 }
  0x28   : > { %p530_p0 = pneg %p529_p13 }
  0x2a   : > { %p537_p7 = pnand %p536_p3, %p530_p0 }
  0x2c   : > { %540 = shalt.err (!%p537_p7)
}
  0x2d   : > { %s681_s18 = smov 128   ;;  %s682_s20 = smov 8  }
  0x2e   : > { %426 = dma.hbm_to_vmem [thread:$0]  (!%p776_p2), %s908_s0, 256, %s156_s28, [#allocation3], %s681_s18, %s681_s18, %s682_s20  }
  0x2f   : > { %p404_p13 = scmp.ge.s32.totalorder %s678_s16, 1  ;;  %p187_p4 = scmp.lt.s32.totalorder %s678_s16, 3 }
  0x30   : > { %s683_s30 = smov [#allocation5]   ;;  %s541_s6 = scalar_lea.hbm %s909_s1, 256 }
  0x31   : > { %p807_p8 = pnand %p404_p13, %p187_p4  ;;  %s179_s3 = sshll.u32 %s683_s30, 4  ;;  %s180_s3 = int_to_ptr.vmem [resolvable:$true] %s179_s3 }
  0x32   : > { %p542_p6 = scmp.ne.s32.totalorder %s909_s1, %s541_s6  ;;  %p548_p9 = scmp.lt.u32.totalorder %s541_s6, %s541_s6 }
  0x33   : > { %s918_s27 = scalar_select %p807_p8, 1, 0 }
  0x34   : > { %p544_p12 = pnand %p542_p6, %p513_p5  ;;  %p550_p10 = scmp.lt.u32.totalorder %s541_s6, %s909_s1 }
  0x36   : > { %p545_p0 = pneg %p544_p12  ;;  %p551_p11 = por %p550_p10, %p548_p9 }
  0x38   : > { %p552_p1 = pnand %p551_p11, %p545_p0 }
  0x3a   : > { %555 = shalt.err (!%p552_p1)
}
  0x3b   : > { %s556_s17 = scalar_lea.vmem %s180_s3, 256  ;;  %s563_s22 = scalar_lea.vmem %s180_s3, 512 }
  0x3c   : > { %p557_p3 = scmp.ne.s32.totalorder %s180_s3, %s556_s17  ;;  %p564_p4 = scmp.lt.s32.totalorder %s180_s3, %s180_s3 }
  0x3d   : > { %p565_p8 = scmp.lt.s32.totalorder %s563_s22, %s556_s17 }
  0x3e   : > { %p559_p7 = pnand %p557_p3, %p513_p5 }
  0x3f   : > { %p566_p6 = por %p565_p8, %p564_p4 }
  0x40   : > { %p560_p13 = pneg %p559_p7 }
  0x42   : > { %p567_p12 = pnand %p566_p6, %p560_p13 }
  0x44   : > { %570 = shalt.err (!%p567_p12)
}
  0x45   : > { %429 = dma.hbm_to_vmem [thread:$0]  (!%p776_p2), %s909_s1, 256, %s180_s3, [#allocation6], %s681_s18, %s681_s18, %s682_s20  }
  0x46   : > { %p919_p0 = scmp.ne.s32.totalorder %s918_s27, 0 }
  0x47   : > { %s193_s4 = sand.u32 (!%p919_p0), 1, %s666_s13   ;;  %p920_p5 = scmp.ne.s32.totalorder (!%p919_p0), %s914_s21, 0 }
  0x48   : > { %191 = sbr.rel (%p919_p0) target bundleno = 109 (0x6d), region = 28  ;;  %s405_s5 = sshll.u32 (!%p919_p0), %s193_s4, 4 }
  0x49   : > { %s194_s6 = scalar_lea.sflag (!%p919_p0), [#allocation3], %s193_s4  ;;  %s197_s7 = scalar_lea.vmem (!%p919_p0), [#allocation2], %s405_s5 }
  0x4f   : > { %636 = dma.done.wait (%p920_p5), %s194_s6, 256  }
  0x50   : > { %638 = vsyncadd (%p920_p5), %s194_s6, 4294967040  ;;  %s203_s29 = scalar_lea.sflag [#allocation6], %s193_s4  ;;  %s206_s8 = scalar_lea.vmem [#allocation5], %s405_s5 }
  0x51   : > { %640 = dma.done.wait (%p920_p5), %s203_s29, 256  }
  0x52   : > { %642 = vsyncadd (%p920_p5), %s203_s29, 4294967040  ;;  %v265_v0 = vlaneseq  ;;  %s410_s18 = sshll.u32 %s670_s14, 4  ;;  %s229_s20 = sand.u32 1, %s654_s10   ;;  %v245_v4 = vld [vmem:[%s197_s7] sm:$0xff]  ;;  %v246_v5 = vld [vmem:[%s197_s7 + $0x8] sm:$0xff] }
  0x53   : > { %v268_v3 = vstv %s410_s18  ;;  %v247_v6 = vld [vmem:[%s206_s8] sm:$0xff]  ;;  %v248_v7 = vld [vmem:[%s206_s8 + $0x8] sm:$0xff]  ;;  %s407_s21 = sshll.u32 %s229_s20, 3  ;;  %s412_s27 = sshll.u32 %s670_s14, 7 }
  0x54   : > { %v266_v1 = vshrl.u32 %v265_v0, 7  ;;  %v249_v8 = vsub.f32 %v245_v4, %v247_v6  ;;  %v250_v10 = vsub.f32 %v246_v5, %v248_v7  ;;  %s231_s3 = scalar_lea.vmem [#allocation7], %s407_s21  ;;  %s853_s22 = scalar_lea.hbm %s910_s2, %s412_s27 }
  0x55   : > { %s293_s28 = sshll.u32 %s231_s3, 4  ;;  %s280_s23 = scalar_lea.sflag [#allocation4], %s229_s20  ;;  %s855_s28 = int_to_ptr.vmem [resolvable:$true] %s293_s28 }
  0x56   : > { %v267_v2 = vadd.s32 8, %v266_v1  ;;  %v269_v9 = vadd.s32 %v268_v3, %v266_v1  ;;  %v251_v12 = vand.u32 2147483647, %v249_v8  ;;  %v255_v13 = vmul.f32 0.5, %v249_v8  ;;  %s571_s30 = scalar_lea.vmem %s855_s28, 128  ;;  %p921_p8 = scmp.ne.s32.totalorder %s915_s25, 0 }
  0x57   : > { %v252_v14 = vand.u32 2147483647, %v250_v10  ;;  %v256_v15 = vmul.f32 0.5, %v250_v10  ;;  %p572_p2 = scmp.ne.s32.totalorder %s855_s28, %s571_s30  ;;  %s684_s14 = smov [#allocation7]  }
  0x58   : > { %v270_v11 = vadd.s32 %v268_v3, %v267_v2  ;;  %vm253_vm0 = vcmp.lt.f32.partialorder %v251_v12, 1.0  ;;  %v257_v16 = vmul.f32 %v255_v13, %v249_v8  ;;  %v408_v17 = vadd.f32 -0.5, %v251_v12  ;;  %s575_s4 = sshll.u32 %s684_s14, 4  ;;  %s576_s4 = int_to_ptr.vmem [resolvable:$false] %s575_s4 }
  0x59   : > { %vm271_vm1 = vcmp.lt.s32.totalorder %v269_v9, 16  ;;  %vm254_vm2 = vcmp.lt.f32.partialorder %v252_v14, 1.0  ;;  %v258_v18 = vmul.f32 %v256_v15, %v250_v10  ;;  %v409_v19 = vadd.f32 -0.5, %v252_v14  ;;  %p573_p9 = pnand %p572_p2, %p921_p8  ;;  %s577_s5 = scalar_lea.vmem %s576_s4, 256 }
  0x5a   : > { %vm272_vm3 = vcmp.lt.s32.totalorder %v270_v11, 16  ;;  %v261_v20 = vsel %vm253_vm0, %v257_v16, %v408_v17  ;;  %p578_p11 = scmp.lt.s32.totalorder %s855_s28, %s576_s4  ;;  %p579_p1 = scmp.lt.s32.totalorder %s577_s5, %s571_s30 }
  0x5b   : > { %v262_v21 = vsel %vm254_vm2, %v258_v18, %v409_v19  ;;  %v273_v22 = vsel %vm271_vm1, %v261_v20, 0.0  ;;  %p574_p10 = pneg %p573_p9 }
  0x5c   : > { %v274_v23 = vsel %vm272_vm3, %v262_v21, 0.0  ;;  %p580_p3 = por %p579_p1, %p578_p11 }
  0x5d   : > { %v276_v24 = vadd.f32 %v274_v23, %v273_v22 }
  0x5e   : > { %p581_p7 = pnand %p580_p3, %p574_p10 }
  0x5f   : > { %278 = vst [vmem:[%s231_s3] sm:$0xff] %v276_v24 }
  0x60   : > { %584 = shalt.err (!%p581_p7)
}
  0x61   : > { %s585_s6 = scalar_lea.hbm %s853_s22, 128  ;;  %s589_s8 = scalar_lea.hbm %s910_s2, 256 }
  0x62   : > { %p586_p13 = scmp.ne.s32.totalorder %s853_s22, %s585_s6  ;;  %p590_p12 = scmp.lt.u32.totalorder %s853_s22, %s910_s2 }
  0x63   : > { %p591_p0 = scmp.lt.u32.totalorder %s589_s8, %s585_s6  ;;  %p593_p2 = scmp.lt.u32.totalorder %s585_s6, %s853_s22 }
  0x64   : > { %p587_p4 = pnand %p586_p13, %p921_p8 }
  0x65   : > { %p592_p5 = por %p591_p0, %p590_p12 }
  0x66   : > { %p588_p6 = pneg %p587_p4 }
  0x67   : > { %p594_p9 = por %p593_p2, %p592_p5 }
  0x69   : > { %p595_p10 = pnand %p594_p9, %p588_p6 }
  0x6b   : > { %598 = shalt.err (!%p595_p10)
}
  0x6c   : > { %421 = dma.vmem_to_hbm [thread:$0]  (%p921_p8), %s855_s28, 128, %s853_s22, %s280_s23  }
  0x6d PF: > { %s305_s21 = sand.u32 1, %s650_s9   ;;  %p922_p11 = scmp.ne.s32.totalorder %s916_s26, 0 }
  0x6e   : > { %p923_p1 = scmp.ge.s32.totalorder %s678_s16, 2  ;;  %s306_s27 = scalar_lea.sflag [#allocation4], %s305_s21 }
  0x70   : > { %p431_p3 = pnand %p923_p1, %p922_p11 }
  0x72   : > { %644 = dma.done.wait (!%p431_p3), %s306_s27, 128  }
  0x73   : > { %646 = vsyncadd (!%p431_p3), %s306_s27, 4294967168  ;;  %s21_s16 = sadd.s32 1, %s678_s16   ;;  %s924_s9 = smov %s654_s10 }
  0x74   : > { %p18_p7 = scmp.ge.s32.totalorder %s21_s16, 4   ;;  %s925_s10 = smov %s658_s11 }
  0x75   : > { %s926_s11 = smov %s758_s24  ;;  %s927_s12 = smov %s666_s13 }
  0x76   : > { %s898_s13 = smov 0   ;;  %s928_s14 = smov %s674_s15 }
  0x77   : > { %s929_s15 = smov %s931_s19  ;;  %20 = sbr.rel (!%p18_p7) target bundleno = 9 (0x9), region = 90 }
  0x7e   :  { %311 = vsyncpa [#allocation3], 1 }
  0x7f   :  { %313 = vsyncpa [#allocation3 + $0x1], 1 }
  0x80   :  { %314 = vsyncpa [#allocation6], 1 }
  0x81   :  { %316 = vsyncpa [#allocation6 + $0x1], 1 }
  0x82   :  { %317 = vsyncpa [#allocation4], 1 }
  0x83   :  { %319 = vsyncpa [#allocation4 + $0x1], 1 }

</bundles_post_ra>
